<compile_context>
chip_gen: v7x
topology: tpu7x:2x2x1
jax: 0.10.0
libtpu: 0.0.40
codegen_flags: <defaults>
</compile_context>

<pallas_src>
import functools

import jax
import jax.numpy as jnp
from jax.experimental import pallas as pl
from jax.experimental.pallas import tpu as pltpu


DEFAULT_BLOCK_TARGET_BYTES = 2 * 1024 * 1024   # per-block x bytes; bump to 4-8 MiB on v7x
VMEM_LIMIT_BYTES = 48 * 1024 * 1024            # > 16/32 MiB scoped defaults, < 64 MiB v7x physical

# second-minor (sublane) granularity by itemsize (f32: 8, bf16: 16, int8/fp8: 32)
_SUBLANE_MULT = {1: 32, 2: 16, 4: 8, 8: 8}


# ----------------------------------------------------------------------------
# Table construction (one-time, mirrors Rotary.__init__ + fused-layout prep)
# ----------------------------------------------------------------------------
def make_rotary_tables(dim: int, max_seq_len: int):
    """Deterministic buffer construction, mirroring Rotary.__init__ (float32)."""
    dim_quarter = max(1, dim // 4)
    angular_freq = (1.0 / 1024.0) ** jnp.linspace(
        0.0, 1.0, num=dim_quarter, dtype=jnp.float32
    )
    angular_freq = jnp.concatenate(
        [angular_freq, jnp.zeros((dim_quarter,), dtype=jnp.float32)]
    )
    t = jnp.arange(max_seq_len, dtype=jnp.float32)
    theta = jnp.einsum("i,j->ij", t, angular_freq)   # (max_seq_len, 2*dim_quarter)
    return jnp.cos(theta), jnp.sin(theta)


def fuse_rotary_tables(cos_buf, sin_buf, *, num_heads: int, table_dtype=jnp.float32):
    """One-time prep: lane-dense fused tables of width num_heads * head_dim.

    cos_buf / sin_buf: (max_seq_len, head_dim // 2) float32, as built by
    make_rotary_tables.  Returns (cos_w, sin_lo, sin_hi), each
    (max_seq_len, num_heads * head_dim):
        per head: cos_w = [cos | cos], sin_lo = [sin | 0], sin_hi = [0 | -sin]
    """
    dim_half = cos_buf.shape[1]
    # TODO(synk): D % 4 != 0 path of the PyTorch module (buffer width != D//2)
    # is not supported by this kernel.
    zeros = jnp.zeros_like(sin_buf)
    cos_head = jnp.concatenate([cos_buf, cos_buf], axis=1)     # (S, D)
    sin_lo_head = jnp.concatenate([sin_buf, zeros], axis=1)    # (S, D)
    sin_hi_head = jnp.concatenate([zeros, -sin_buf], axis=1)   # (S, D)

    def tile(a):
        return jnp.tile(a, (1, num_heads)).astype(table_dtype)  # (S, H*D)

    del dim_half
    return tile(cos_head), tile(sin_lo_head), tile(sin_hi_head)


# ----------------------------------------------------------------------------
# Kernel
# ----------------------------------------------------------------------------
def _rope_kernel(cos_ref, sin_lo_ref, sin_hi_ref, x_ref, o_ref, *, dim_half: int):
    # cos/sin_lo/sin_hi refs: (tT, H*D) fused lane-dense tables.
    # x_ref / o_ref        : (bB, tT, H*D).
    x = x_ref[...].astype(jnp.float32)          # math in f32 (matches the PyTorch forward)
    hd = x.shape[-1]

    # Tiny (1, tT, H*D)-style broadcasts over the leading bB dim are free; no
    # full-block broadcast of the tables is materialized.
    cos = cos_ref[...].astype(jnp.float32)[None]
    s_lo = sin_lo_ref[...].astype(jnp.float32)[None]
    s_hi = sin_hi_ref[...].astype(jnp.float32)[None]

    # pltpu.roll matches jnp.roll: out[k] = x[(k - shift) % N] along the axis.
    #   fwd[k] = x[(k + dim_half) % HD] -> x2 of the same head on first-half lanes
    #   bwd[k] = x[(k - dim_half) % HD] -> x1 of the same head on second-half lanes
    # Wrong-head lanes of each roll are multiplied by the zero half of its table.
    fwd = pltpu.roll(x, shift=hd - dim_half, axis=2)
    bwd = pltpu.roll(x, shift=dim_half, axis=2)

    out = x * cos
    out = out + fwd * s_lo
    out = out + bwd * s_hi
    o_ref[...] = out.astype(o_ref.dtype)


# ----------------------------------------------------------------------------
# Tile selection
# ----------------------------------------------------------------------------
def _choose_tiles(B: int, T: int, HD: int, itemsize: int, target_bytes: int):
    """Pick (bB, tT) so one x/o block is ~target_bytes and the grid keeps enough steps."""
    sub = _SUBLANE_MULT.get(itemsize, 8)
    row_bytes = HD * itemsize
    rows = max(1, target_bytes // row_bytes)

    if rows >= T:
        # Whole sequence fits; fold batch into the block (block-batch factor).
        tT = T
        bB = int(max(1, min(B, rows // max(T, 1))))
        while bB > 1 and B % bB != 0:          # prefer uniform batch blocks
            bB -= 1
    else:
        bB = 1
        tT = min(T, max(sub, (rows // sub) * sub))
        # Prefer an exact divisor of T (no ragged tail block) among sub-multiples.
        for cand in range(tT, sub - 1, -sub):
            if T % cand == 0:
                tT = cand
                break
        # else: keep a non-divisor tile; cdiv grid + masked edge block handles it.

    def steps(bb, tt):
        return -(-T // tt) * -(-B // bb)

    # Keep a few grid steps around so v7x's two TensorCores both get work and
    # the software pipeline can warm up.
    while steps(bB, tT) < 8:
        if bB > 1:
            bB = max(1, bB // 2)
        elif tT >= 2 * sub and (tT // 2) % sub == 0:
            tT //= 2
        else:
            break
    return bB, tT


# ----------------------------------------------------------------------------
# Forward wrapper
# ----------------------------------------------------------------------------
def rotary_forward(x_BTHD, cos_w, sin_lo, sin_hi, *,
                   block_t: int | None = None,
                   block_b: int | None = None,
                   target_bytes: int = DEFAULT_BLOCK_TARGET_BYTES):
    B, T, H, D = x_BTHD.shape
    HD = H * D
    dim_half = D // 2
    assert D % 4 == 0, "kernel assumes head_dim divisible by 4 (cos buffer width == D//2)"
    assert cos_w.shape[0] >= T, "rotary tables shorter than sequence"
    assert cos_w.shape[1] == HD and sin_lo.shape[1] == HD and sin_hi.shape[1] == HD, \
        "fused tables must be prepared for this num_heads/head_dim (fuse_rotary_tables)"

    # Fused lane-dense layout: (B, T, H*D).  The reshape is a free row-major view.
    x_flat = x_BTHD.reshape(B, T, HD)

    bB, tT = _choose_tiles(B, T, HD, x_BTHD.dtype.itemsize, target_bytes)
    if block_t is not None:
        tT = block_t
    if block_b is not None:
        bB = block_b
    num_t = pl.cdiv(T, tT)
    num_b = pl.cdiv(B, bB)

    kernel = functools.partial(_rope_kernel, dim_half=dim_half)

    out_flat = pl.pallas_call(
        kernel,
        out_shape=jax.ShapeDtypeStruct((B, T, HD), x_BTHD.dtype),
        grid_spec=pltpu.PrefetchScalarGridSpec(
            num_scalar_prefetch=0,
            # b innermost: the table block index depends only on t, so table
            # DMAs are skipped across consecutive batch tiles.
            grid=(num_t, num_b),
            in_specs=[
                pl.BlockSpec((tT, HD), lambda t, b: (t, 0)),
                pl.BlockSpec((tT, HD), lambda t, b: (t, 0)),
                pl.BlockSpec((tT, HD), lambda t, b: (t, 0)),
                pl.BlockSpec((bB, tT, HD), lambda t, b: (b, t, 0)),
            ],
            out_specs=pl.BlockSpec((bB, tT, HD), lambda t, b: (b, t, 0)),
        ),
        compiler_params=pltpu.CompilerParams(
            dimension_semantics=("parallel", "parallel"),
            vmem_limit_bytes=VMEM_LIMIT_BYTES,
        ),
    )(cos_w, sin_lo, sin_hi, x_flat)

    return out_flat.reshape(B, T, H, D)


# ----------------------------------------------------------------------------
# Pure-JAX reference mirroring the PyTorch forward
# ----------------------------------------------------------------------------
def rotary_reference(x_BTHD, cos_buf, sin_buf):
    B, T, H, D = x_BTHD.shape
    dim_half = D // 2
    cos = cos_buf[None, :T, None, :dim_half]
    sin = sin_buf[None, :T, None, :dim_half]
    xf = x_BTHD.astype(jnp.float32)
    x1, x2 = xf[..., :dim_half], xf[..., dim_half:]
    y1 = x1 * cos + x2 * sin
    y2 = x1 * (-sin) + x2 * cos
    return jnp.concatenate([y1, y2], axis=-1).astype(x_BTHD.dtype)


if __name__ == "__main__":
    # Small shapes consistent with the module: x is (B, T, H, D); H*D = 128 lanes.
    B, T, H, D = 2, 8, 4, 32
    MAX_SEQ_LEN = 16

    key = jax.random.PRNGKey(0)
    x = jax.random.normal(key, (B, T, H, D), dtype=jnp.float32).astype(jnp.bfloat16)

    # One-time table prep (Rotary.__init__ equivalent + fused lane-dense layout).
    cos_buf, sin_buf = make_rotary_tables(D, MAX_SEQ_LEN)
    cos_w, sin_lo, sin_hi = fuse_rotary_tables(
        cos_buf, sin_buf, num_heads=H, table_dtype=x.dtype
    )

    out = rotary_forward(x, cos_w, sin_lo, sin_hi)
    out = jax.block_until_ready(out)

    ref = rotary_reference(x, cos_buf, sin_buf)
    assert out.shape == x.shape and out.dtype == x.dtype
    assert jnp.allclose(
        out.astype(jnp.float32), ref.astype(jnp.float32), atol=1e-2, rtol=1e-2
    )

    print("KERNEL_OK")
</pallas_src>

<mosaic_0001>
module attributes {stable_mosaic.version = 11 : i64} {
  func.func @_rope_kernel(%arg0: i32, %arg1: i32, %arg2: memref<8x128xbf16, #tpu.memory_space<vmem>>, %arg3: memref<8x128xbf16, #tpu.memory_space<vmem>>, %arg4: memref<8x128xbf16, #tpu.memory_space<vmem>>, %arg5: memref<1x8x128xbf16, #tpu.memory_space<vmem>>, %arg6: memref<1x8x128xbf16, #tpu.memory_space<vmem>>) attributes {dimension_semantics = [#tpu.dimension_semantics<parallel>, #tpu.dimension_semantics<parallel>], iteration_bounds = array<i64: 1, 2>, scalar_prefetch = 0 : i64, scratch_operands = 0 : i64, tpu.core_type = #tpu.core_type<tc>, window_params = [{transform_indices = @transform_0, window_bounds = array<i64: 8, 128>}, {transform_indices = @transform_1, window_bounds = array<i64: 8, 128>}, {transform_indices = @transform_2, window_bounds = array<i64: 8, 128>}, {transform_indices = @transform_3, window_bounds = array<i64: 1, 8, 128>}, {transform_indices = @transform_4, window_bounds = array<i64: 1, 8, 128>}]} {
    %c0 = arith.constant 0 : index
    %c0_0 = arith.constant 0 : index
    %c0_1 = arith.constant 0 : index
    %0 = vector.load %arg5[%c0, %c0_0, %c0_1] : memref<1x8x128xbf16, #tpu.memory_space<vmem>>, vector<1x8x128xbf16>
    %1 = arith.extf %0 : vector<1x8x128xbf16> to vector<1x8x128xf32>
    %c0_2 = arith.constant 0 : index
    %c0_3 = arith.constant 0 : index
    %2 = vector.load %arg2[%c0_2, %c0_3] : memref<8x128xbf16, #tpu.memory_space<vmem>>, vector<8x128xbf16>
    %3 = arith.extf %2 : vector<8x128xbf16> to vector<8x128xf32>
    %4 = vector.shape_cast %3 : vector<8x128xf32> to vector<1x8x128xf32>
    %c0_4 = arith.constant 0 : index
    %c0_5 = arith.constant 0 : index
    %5 = vector.load %arg3[%c0_4, %c0_5] : memref<8x128xbf16, #tpu.memory_space<vmem>>, vector<8x128xbf16>
    %6 = arith.extf %5 : vector<8x128xbf16> to vector<8x128xf32>
    %7 = vector.shape_cast %6 : vector<8x128xf32> to vector<1x8x128xf32>
    %c0_6 = arith.constant 0 : index
    %c0_7 = arith.constant 0 : index
    %8 = vector.load %arg4[%c0_6, %c0_7] : memref<8x128xbf16, #tpu.memory_space<vmem>>, vector<8x128xbf16>
    %9 = arith.extf %8 : vector<8x128xbf16> to vector<8x128xf32>
    %10 = vector.shape_cast %9 : vector<8x128xf32> to vector<1x8x128xf32>
    %c112_i32 = arith.constant 112 : i32
    %11 = tpu.dynamic_rotate %1 by %c112_i32 dim 2 : vector<1x8x128xf32>, i32 -> vector<1x8x128xf32>
    %c16_i32 = arith.constant 16 : i32
    %12 = tpu.dynamic_rotate %1 by %c16_i32 dim 2 : vector<1x8x128xf32>, i32 -> vector<1x8x128xf32>
    %13 = arith.mulf %1, %4 : vector<1x8x128xf32>
    %14 = arith.mulf %11, %7 : vector<1x8x128xf32>
    %15 = arith.addf %13, %14 : vector<1x8x128xf32>
    %16 = arith.mulf %12, %10 : vector<1x8x128xf32>
    %17 = arith.addf %15, %16 : vector<1x8x128xf32>
    %18 = arith.truncf %17 : vector<1x8x128xf32> to vector<1x8x128xbf16>
    %c0_8 = arith.constant 0 : index
    %c0_9 = arith.constant 0 : index
    %c0_10 = arith.constant 0 : index
    %19 = vector.load %arg6[%c0_8, %c0_9, %c0_10] : memref<1x8x128xbf16, #tpu.memory_space<vmem>>, vector<1x8x128xbf16>
    tpu.vector_store %arg6[%c0_8, %c0_9, %c0_10], %18 {strides = array<i32>} : memref<1x8x128xbf16, #tpu.memory_space<vmem>>, vector<1x8x128xbf16>,
    return
  }
  func.func @transform_0(%arg0: i32, %arg1: i32) -> (i32, i32) {
    %c0_i32 = arith.constant 0 : i32
    %c0_i32_0 = arith.constant 0 : i32
    return %arg0, %c0_i32 : i32, i32
  }
  func.func @transform_1(%arg0: i32, %arg1: i32) -> (i32, i32) {
    %c0_i32 = arith.constant 0 : i32
    %c0_i32_0 = arith.constant 0 : i32
    return %arg0, %c0_i32 : i32, i32
  }
  func.func @transform_2(%arg0: i32, %arg1: i32) -> (i32, i32) {
    %c0_i32 = arith.constant 0 : i32
    %c0_i32_0 = arith.constant 0 : i32
    return %arg0, %c0_i32 : i32, i32
  }
  func.func @transform_3(%arg0: i32, %arg1: i32) -> (i32, i32, i32) {
    %c0_i32 = arith.constant 0 : i32
    %c0_i32_0 = arith.constant 0 : i32
    return %arg1, %arg0, %c0_i32 : i32, i32, i32
  }
  func.func @transform_4(%arg0: i32, %arg1: i32) -> (i32, i32, i32) {
    %c0_i32 = arith.constant 0 : i32
    %c0_i32_0 = arith.constant 0 : i32
    return %arg1, %arg0, %c0_i32 : i32, i32, i32
  }
}

</mosaic_0001>

<bundles_post_ra>
// kernel: tpu_custom_call.1
= control target key start
LH: loop header
LB: loop body
LE: loop exit
PB: predicated region body
PF: predicated region fallthrough
CT: control target
= control target key end

     0   :  { %9 = vsyncpa [#allocation3], 0  ;;  %s941_s0 = inlined_call_operand.hbm [shape: bf16[16,128], index: 0, kind: input, shape index: {}]   ;;  %s942_s1 = inlined_call_operand.hbm [shape: bf16[16,128], index: 1, kind: input, shape index: {}]   ;;  %s943_s2 = inlined_call_operand.hbm [shape: bf16[16,128], index: 2, kind: input, shape index: {}]   ;;  %s944_s3 = inlined_call_operand.vmem [shape: bf16[2,8,128], index: 3, kind: input, shape index: {}]   ;;  %s945_s4 = inlined_call_operand.hbm [shape: bf16[2,8,128], index: 4, kind: output, shape index: {}]  }
   0x1   :  { %10 = vsyncpa [#allocation6], 0 }
   0x2   :  { %11 = vsyncpa [#allocation4], 0 }
   0x3   :  { %13 = vsyncpa [#allocation4 + $0x1], 0  ;;  %s727_s15 = smov 0   ;;  %s729_s16 = smov 0  }
   0x4   :  { %s731_s17 = smov 0   ;;  %s733_s18 = smov 0  }
   0x5   :  { %s735_s19 = smov 0   ;;  %s737_s20 = smov 0  }
   0x6 LB: > { %s419_s21 = sadd.s32 4294967295, %s694_s20   ;;  %s420_s22 = sadd.s32 4294967294, %s694_s20   ;;  %s694_s20 = sphi %s737_s20, %s19_s20   ;;  %s690_s19 = sphi %s735_s19, %s967_s19   ;;  %s686_s18 = sphi %s733_s18, %s966_s18   ;;  %s682_s17 = sphi %s731_s17, %s965_s17   ;;  %s678_s16 = sphi %s729_s16, %s964_s16   ;;  %s674_s15 = sphi %s727_s15, %s963_s15  }
   0x7   : > { %s28_s23 = sadd.s32 1, %s690_s19  ;;  %s146_s24 = sadd.s32 1, %s682_s17 }
   0x8   : > { %p29_p0 = scmp.ge.s32.totalorder %s28_s23, 2  ;;  %p156_p1 = scmp.ne.s32.totalorder %s682_s17, %s678_s16 }
   0x9   : > { %p157_p2 = scmp.eq.s32.totalorder %s419_s21, 1  ;;  %p162_p3 = scmp.ne.s32.totalorder %s678_s16, %s674_s15 }
   0xa   : > { %s969_s23 = smov (%p29_p0, %s28_s23), 0  ;;  %p163_p5 = scmp.eq.s32.totalorder %s420_s22, 1 }
   0xb   : > { %951 = sst [smem:[#allocation12_spill]] %s969_s23  ;;  %p767_p4 = por %p157_p2, %p156_p1 }
   0xc   : > { %s141_s26 = ssub.s32 %s690_s19, %s969_s23  ;;  %p421_p6 = scmp.ge.s32.totalorder %s694_s20, 1 }
   0xd   : > { %s952_s25 = scalar_select %p767_p4, 1, 0 }
   0xe   : > { %p144_p7 = scmp.eq.s32.totalorder %s141_s26, 0  ;;  %p774_p8 = por %p163_p5, %p162_p3 }
   0xf   : > { %p170_p9 = scmp.lt.s32.totalorder %s694_s20, 3  ;;  %p786_p11 = scmp.eq.s32.totalorder %s419_s21, 0 }
  0x10   : > { %s953_s27 = scalar_select %p774_p8, 1, 0 }
  0x11   : > { %s780_s28 = scalar_select %p144_p7, %s682_s17, %s146_s24  }
  0x12   : > { %p782_p10 = pnand %p421_p6, %p170_p9  ;;  %s696_s5 = smov [#allocation5]  }
  0x13   : > { %s955_s30 = scalar_select %p786_p11, 1, 0 }
  0x14   : > { %s954_s29 = scalar_select %p782_p10, 1, 0 }
  0x15   : > { %p450_p12 = pneg %p782_p10  ;;  %s198_s6 = sshll.u32 %s696_s5, 4  ;;  %s199_s6 = int_to_ptr.vmem [resolvable:$true] %s198_s6 }
  0x16   : > { %s697_s8 = smov [#allocation2]   ;;  %s524_s12 = scalar_lea.hbm %s942_s1, 64 }
  0x17   : > { %p794_p13 = pnand %p786_p11, %p450_p12  ;;  %s185_s9 = sshll.u32 %s697_s8, 4  ;;  %s798_s9 = int_to_ptr.vmem [resolvable:$true] %s185_s9 }
  0x18   : > { %p525_p0 = scmp.ne.s32.totalorder %s942_s1, %s524_s12  ;;  %s529_s26 = scalar_lea.hbm %s942_s1, 128 }
  0x19   : > { %p808_p1 = pneg %p794_p13  ;;  %p530_p5 = scmp.lt.u32.totalorder %s529_s26, %s524_s12 }
  0x1a   : > { %p531_p6 = scmp.lt.u32.totalorder %s524_s12, %s942_s1 }
  0x1b   : > { %p527_p2 = pnand %p808_p1, %p525_p0 }
  0x1c   : > { %p532_p7 = por %p531_p6, %p530_p5 }
  0x1d   : > { %p528_p3 = pneg %p527_p2 }
  0x1f   : > { %p533_p9 = pnand %p532_p7, %p528_p3 }
  0x21   : > { %536 = shalt.err (!%p533_p9)
}
  0x22   : > { %s537_s10 = scalar_lea.vmem %s199_s6, 64  ;;  %p545_p0 = scmp.lt.s32.totalorder %s199_s6, %s199_s6 }
  0x23   : > { %p538_p12 = scmp.ne.s32.totalorder %s199_s6, %s537_s10  ;;  %p546_p2 = scmp.lt.s32.totalorder %s537_s10, %s537_s10 }
  0x25   : > { %p540_p8 = pnand %p538_p12, %p808_p1  ;;  %p547_p11 = por %p546_p2, %p545_p0 }
  0x27   : > { %p541_p4 = pneg %p540_p8 }
  0x29   : > { %p548_p10 = pnand %p547_p11, %p541_p4 }
  0x2b   : > { %551 = shalt.err (!%p548_p10)
}
  0x2c   : > { %456 = dma.hbm_to_vmem [thread:$0]  (!%p794_p13), %s942_s1, 64, %s199_s6, [#allocation6]  }
  0x2d   : > { %s552_s22 = scalar_lea.hbm %s941_s0, 64  ;;  %s557_s10 = scalar_lea.hbm %s941_s0, 128 }
  0x2e   : > { %p553_p8 = scmp.ne.s32.totalorder %s941_s0, %s552_s22  ;;  %p558_p4 = scmp.lt.u32.totalorder %s557_s10, %s552_s22 }
  0x2f   : > { %p559_p10 = scmp.lt.u32.totalorder %s552_s22, %s941_s0 }
  0x30   : > { %p555_p3 = pnand %p553_p8, %p808_p1 }
  0x31   : > { %p560_p11 = por %p559_p10, %p558_p4 }
  0x32   : > { %p556_p5 = pneg %p555_p3 }
  0x34   : > { %p561_p6 = pnand %p560_p11, %p556_p5 }
  0x36   : > { %564 = shalt.err (!%p561_p6)
}
  0x37   : > { %s565_s6 = scalar_lea.vmem %s798_s9, 64  ;;  %p573_p0 = scmp.lt.s32.totalorder %s798_s9, %s798_s9 }
  0x38   : > { %p566_p7 = scmp.ne.s32.totalorder %s798_s9, %s565_s6  ;;  %p574_p2 = scmp.lt.s32.totalorder %s565_s6, %s565_s6 }
  0x3a   : > { %p568_p9 = pnand %p566_p7, %p808_p1  ;;  %p575_p8 = por %p574_p2, %p573_p0 }
  0x3c   : > { %p569_p12 = pneg %p568_p9 }
  0x3e   : > { %p576_p3 = pnand %p575_p8, %p569_p12 }
  0x40   : > { %579 = shalt.err (!%p576_p3)
}
  0x41   : > { %453 = dma.hbm_to_vmem [thread:$0]  (!%p794_p13), %s941_s0, 64, %s798_s9, [#allocation3]  }
  0x42   : > { %s698_s12 = smov [#allocation7]   ;;  %s580_s26 = scalar_lea.hbm %s943_s2, 64 }
  0x43   : > { %s211_s14 = sshll.u32 %s698_s12, 4  ;;  %p581_p5 = scmp.ne.s32.totalorder %s943_s2, %s580_s26  ;;  %s212_s14 = int_to_ptr.vmem [resolvable:$true] %s211_s14 }
  0x44   : > { %s585_s6 = scalar_lea.hbm %s943_s2, 128  ;;  %p587_p6 = scmp.lt.u32.totalorder %s580_s26, %s943_s2 }
  0x45   : > { %p583_p4 = pnand %p581_p5, %p808_p1  ;;  %p586_p11 = scmp.lt.u32.totalorder %s585_s6, %s580_s26 }
  0x47   : > { %p584_p10 = pneg %p583_p4  ;;  %p588_p7 = por %p587_p6, %p586_p11 }
  0x49   : > { %p589_p9 = pnand %p588_p7, %p584_p10 }
  0x4b   : > { %592 = shalt.err (!%p589_p9)
}
  0x4c   : > { %s593_s13 = scalar_lea.vmem %s212_s14, 64  ;;  %p601_p8 = scmp.lt.s32.totalorder %s212_s14, %s212_s14 }
  0x4d   : > { %p594_p12 = scmp.ne.s32.totalorder %s212_s14, %s593_s13  ;;  %p602_p3 = scmp.lt.s32.totalorder %s593_s13, %s593_s13 }
  0x4f   : > { %p596_p0 = pnand %p594_p12, %p808_p1  ;;  %p603_p5 = por %p602_p3, %p601_p8 }
  0x51   : > { %p597_p2 = pneg %p596_p0 }
  0x53   : > { %p604_p4 = pnand %p603_p5, %p597_p2 }
  0x55   : > { %607 = shalt.err (!%p604_p4)
}
  0x56   : > { %459 = dma.hbm_to_vmem [thread:$0]  (!%p794_p13), %s943_s2, 64, %s212_s14, [#allocation6]  }
  0x57   : > { %p958_p10 = scmp.ne.s32.totalorder %s954_s29, 0 }
  0x58   : > { %p959_p11 = scmp.ne.s32.totalorder (!%p958_p10), %s955_s30, 0 }
  0x59   : > { %234 = sbr.rel (%p958_p10) target bundleno = 247 (0xf7), region = 36 }
  0x60   : > { %661 = dma.done.wait (%p959_p11), [#allocation3], 64  }
  0x61   : > { %663 = vsyncadd (%p959_p11), [#allocation3], 4294967232 }
  0x62   : > { %665 = dma.done.wait (%p959_p11), [#allocation6], 128  }
  0x63   : > { %667 = vsyncadd (%p959_p11), [#allocation6], 4294967168  ;;  %p270_p1 = scmp.lt.s32.totalorder %s686_s18, 1  ;;  %s699_s26 = smov 112   ;;  %v279_v2 = vld [vmem:[#allocation2] sm:$0xf] }
  0x64   : > { %s700_s5 = smov 16   ;;  %v281_v3 = vld [vmem:[#allocation5] sm:$0xf]  ;;  %v280_v4 = vunpack.c.l.bf16 %v279_v2  ;;  %s267_s30 = sand.u32 1, %s678_s16   ;;  %v283_v6 = vld [vmem:[#allocation7] sm:$0xf] }
  0x65   : > { %s271_s7 = scalar_select %p270_p1, %s686_s18, 1  ;;  %v282_v5 = vunpack.c.l.bf16 %v281_v3  ;;  %v284_v10 = vunpack.c.l.bf16 %v283_v6 }
  0x66   : > { %s430_s8 = sshll.u32 %s267_s30, 2  ;;  %s433_s10 = sshll.u32 %s686_s18, 6 }
  0x67   : > { %s431_s21 = sshll.u32 %s271_s7, 2  ;;  %s269_s11 = scalar_lea.vmem [#allocation8], %s430_s8 }
  0x68   : > { %s276_s24 = scalar_lea.vmem %s944_s3, %s431_s21  ;;  %s311_s6 = sshll.u32 %s269_s11, 4  ;;  %s896_s6 = int_to_ptr.vmem [resolvable:$true] %s311_s6 }
  0x69   : > { %v277_v0 = vld [vmem:[%s276_s24] sm:$0xf]  ;;  %s894_s13 = scalar_lea.hbm %s945_s4, %s433_s10  ;;  %s297_s12 = scalar_lea.sflag [#allocation4], %s267_s30 }
  0x6a   : > { %v278_v1 = vunpack.c.l.bf16 %v277_v0  ;;  %s608_s22 = scalar_lea.vmem %s896_s6, 64  ;;  %p960_p6 = scmp.ne.s32.totalorder %s952_s25, 0 }
  0x6b   : > { %p609_p13 = scmp.ne.s32.totalorder %s896_s6, %s608_s22  ;;  %s701_s18 = smov [#allocation8]  }
  0x6c   : > { %285 = vrot.lane.b32.xlu0 %v278_v1, %s699_s26  ;;  %v289_v8 = vmul.f32 %v280_v4, %v278_v1  ;;  %s612_s7 = sshll.u32 %s701_s18, 4  ;;  %s613_s7 = int_to_ptr.vmem [resolvable:$false] %s612_s7 }
  0x6d   : > { %p610_p7 = pnand %p609_p13, %p960_p6  ;;  %s614_s21 = scalar_lea.vmem %s613_s7, 128 }
  0x6e   : > { %p615_p12 = scmp.lt.s32.totalorder %s896_s6, %s613_s7  ;;  %p616_p0 = scmp.lt.s32.totalorder %s614_s21, %s608_s22 }
  0x6f   : > { %p611_p9 = pneg %p610_p7 }
  0x70   : > { %287 = vrot.lane.b32.xlu0 %v278_v1, %s700_s5  ;;  %p617_p2 = por %p616_p0, %p615_p12 }
  0x72   : > { %p618_p8 = pnand %p617_p2, %p611_p9 }
  0xde   : > { %v286_v7 = vpop.permute.xlu0 %285 }
  0xdf   : > { %v290_v9 = vmul.f32 %v286_v7, %v282_v5 }
  0xe1   : > { %v291_v12 = vadd.f32 %v290_v9, %v289_v8 }
  0xe2   : > { %v288_v11 = vpop.permute.xlu0 %287 }
  0xe3   : > { %v292_v13 = vmul.f32 %v288_v11, %v284_v10 }
  0xe5   : > { %v293_v14 = vadd.f32 %v292_v13, %v291_v12 }
  0xe7   : > { %v294_v15 = vpack.c.bf16 %v293_v14, %v293_v14 }
  0xe9   : > { %295 = vst [vmem:[%s269_s11] sm:$0xf] %v294_v15 }
  0xea   : > { %621 = shalt.err (!%p618_p8)
}
  0xeb   : > { %s622_s29 = scalar_lea.hbm %s894_s13, 64  ;;  %s626_s26 = scalar_lea.hbm %s945_s4, 128 }
  0xec   : > { %p623_p3 = scmp.ne.s32.totalorder %s894_s13, %s622_s29  ;;  %p627_p10 = scmp.lt.u32.totalorder %s894_s13, %s945_s4 }
  0xed   : > { %p628_p11 = scmp.lt.u32.totalorder %s626_s26, %s622_s29  ;;  %p630_p13 = scmp.lt.u32.totalorder %s622_s29, %s894_s13 }
  0xee   : > { %p624_p5 = pnand %p623_p3, %p960_p6 }
  0xef   : > { %p629_p1 = por %p628_p11, %p627_p10 }
  0xf0   : > { %p625_p4 = pneg %p624_p5 }
  0xf1   : > { %p631_p7 = por %p630_p13, %p629_p1 }
  0xf3   : > { %p632_p9 = pnand %p631_p7, %p625_p4 }
  0xf5   : > { %635 = shalt.err (!%p632_p9)
}
  0xf6   : > { %448 = dma.vmem_to_hbm [thread:$0]  (%p960_p6), %s896_s6, 64, %s894_s13, %s297_s12  }
  0xf7 PF: > { %p470_p12 = scmp.ge.s32.totalorder %s694_s20, 2  ;;  %s323_s8 = sand.u32 1, %s674_s15  }
  0xf8   : > { %p961_p0 = scmp.ne.s32.totalorder %s953_s27, 0  ;;  %s324_s10 = scalar_lea.sflag [#allocation4], %s323_s8 }
  0xfa   : > { %p461_p2 = pnand %p470_p12, %p961_p0 }
  0xfc   : > { %669 = dma.done.wait (!%p461_p2), %s324_s10, 64  }
  0xfd   : > { %671 = vsyncadd (!%p461_p2), %s324_s10, 4294967232  ;;  %s19_s20 = sadd.s32 1, %s694_s20   ;;  %s962_s25 = sld [smem:[#allocation12_spill]] }
  0xfe   : > { %p16_p8 = scmp.ge.s32.totalorder %s19_s20, 4   ;;  %s963_s15 = smov %s678_s16 }
  0xff   : > { %s964_s16 = smov %s682_s17  ;;  %s965_s17 = smov %s780_s28 }
 0x100   : > { %s966_s18 = smov %s690_s19  ;;  %18 = sbr.rel (!%p16_p8) target bundleno = 6 (0x6), region = 87 }
 0x103   : > { %s967_s19 = smov %s962_s25 }
 0x107   :  { %329 = vsyncpa [#allocation3], 1 }
 0x108   :  { %331 = vsyncpa [#allocation3 + $0x1], 1 }
 0x109   :  { %332 = vsyncpa [#allocation6], 1 }
 0x10a   :  { %333 = vsyncpa [#allocation4], 1 }
 0x10b   :  { %335 = vsyncpa [#allocation4 + $0x1], 1 }

</bundles_post_ra>
